<compile_context>
chip_gen: v6e
topology: v6e:2x2x1
jax: 0.10.0
libtpu: 0.0.40
codegen_flags: <defaults>
</compile_context>

<pallas_src>
import functools

import jax
import jax.numpy as jnp
from jax import lax
from jax.experimental import pallas as pl
from jax.experimental.pallas import tpu as pltpu

_C_IN, _C1, _C2, _C3 = 3, 8, 6, 2
_K2, _K3 = 2, 3
_KF = _K2 + _K3 - 1          # composed conv2∘conv3 kernel size = 4
_C_PAD = 8                   # channel padding -> sublane-aligned blocks
_BN_EPS = 1e-5


def _fused_kernel(x_ref, w_ref, o_ref, *, width, chunk, apply_relu):
    """x_ref: (8, chunk) padded input (row 3 = ones, carries conv1 bias).
    w_ref:  (8, 256) packed weights [fused 4x4 W | conv1 W | fused bias].
    o_ref:  (8, chunk) padded conv3 output (rows 2..7 are zero)."""
    wf = w_ref[:, 0:128]            # fused conv2∘conv3 weights   (8, 16*8)
    w1 = w_ref[:, 128:136]          # conv1 (BN + bias folded)    (8, 8)
    bf = w_ref[:, 136:137]          # fused bias                  (8, 1)

    # conv1 (1x1) + folded BN/bias (+ ReLU) as a single matmul.
    y1 = jnp.dot(w1, x_ref[...], preferred_element_type=jnp.float32)  # (8, chunk)
    if apply_relu:
        y1 = jnp.maximum(y1, 0.0)

    # im2col for the fused 4x4 conv: 16 full-width rolled copies stacked on the
    # 8-aligned channel axis.  Rolls go to the XLU; wrap-around only pollutes
    # columns that the wrapper's VALID crop drops.
    taps = []
    for kh in range(_KF):
        for kw in range(_KF):
            off = kh * width + kw
            taps.append(y1 if off == 0
                        else pltpu.roll(y1, shift=(chunk - off) % chunk, axis=1))
    p = jnp.concatenate(taps, axis=0)                                  # (128, chunk)

    y3 = jnp.dot(wf, p, preferred_element_type=jnp.float32) + bf       # (8, chunk)
    o_ref[...] = y3.astype(o_ref.dtype)


def _fused_forward_pallas(x_pack, w_pack, *, width, hw, imgs_per_step, apply_relu):
    """x_pack: (8, N*HW) f32, w_pack: (8, 256) f32.  Returns (8, N*HW) f32."""
    c_pad, total = x_pack.shape
    chunk = imgs_per_step * hw
    steps = total // chunk

    kernel = functools.partial(_fused_kernel, width=width, chunk=chunk,
                               apply_relu=apply_relu)

    flops = 2 * total * (_C_PAD * _C_PAD + _C_PAD * _KF * _KF * _C_PAD)
    bytes_accessed = 4 * (int(x_pack.size) + int(w_pack.size) + _C_PAD * total)

    return pl.pallas_call(
        kernel,
        out_shape=jax.ShapeDtypeStruct((_C_PAD, total), jnp.float32),
        grid_spec=pltpu.PrefetchScalarGridSpec(
            num_scalar_prefetch=0,
            grid=(steps,),
            in_specs=[
                pl.BlockSpec((c_pad, chunk), lambda g: (0, g)),
                pl.BlockSpec(w_pack.shape, lambda g: (0, 0)),
            ],
            out_specs=pl.BlockSpec((_C_PAD, chunk), lambda g: (0, g)),
        ),
        compiler_params=pltpu.CompilerParams(
            dimension_semantics=("parallel",)),
        cost_estimate=pl.CostEstimate(flops=int(flops), transcendentals=0,
                                      bytes_accessed=int(bytes_accessed)),
    )(x_pack, w_pack)


def _single_tensorcore() -> bool:
    """True for single-TC chips (v5e/v6e); v7x keeps a per-image grid."""
    try:
        kind = jax.devices()[0].device_kind.lower()
    except Exception:
        return True
    return "v7" not in kind


def conv2d_model_forward(params, x_nchw, use_bn=True, activation="relu"):
    """Forward pass of Conv2dModelForPrunning.  Input/output are NCHW."""
    n, cin, h, w = x_nchw.shape
    hw = h * w
    ho = h - (_K2 - 1) - (_K3 - 1)
    wo = w - (_K2 - 1) - (_K3 - 1)

    # ---- input slab: channels padded to 8, row `cin` = ones (carries conv1
    # bias through the matmul); images stacked along the lane axis. ----------
    x = x_nchw.astype(jnp.float32).reshape(n, cin, hw)
    ones = jnp.ones((n, 1, hw), jnp.float32)
    zeros = jnp.zeros((n, _C_PAD - cin - 1, hw), jnp.float32)
    x_pack = jnp.concatenate([x, ones, zeros], axis=1)                  # (N, 8, HW)
    x_pack = x_pack.transpose(1, 0, 2).reshape(_C_PAD, n * hw)          # (8, N*HW)

    # ---- conv1 weights with inference BatchNorm + bias folded in -----------
    w1 = params["w1"].astype(jnp.float32)                               # (8, 3)
    b1 = params["b1"].astype(jnp.float32)                               # (8,)
    if use_bn:
        scale = params["gamma"] / jnp.sqrt(params["running_var"] + _BN_EPS)
        shift = params["beta"] - params["running_mean"] * scale
        w1_eff = w1 * scale[:, None]
        b1_eff = b1 * scale + shift
    else:
        w1_eff, b1_eff = w1, b1
    # TODO(synk): training-mode BatchNorm (batch statistics) is not implemented;
    # use_bn=True means inference BN (running stats) folded into conv1.
    w1_aug = jnp.zeros((_C_PAD, _C_PAD), jnp.float32)
    w1_aug = w1_aug.at[:, :cin].set(w1_eff).at[:, cin].set(b1_eff)      # (8, 8)

    # ---- compose conv2 (2x2, 8->6) and conv3 (3x3, 6->2) into one 4x4 conv --
    w2 = params["w2"].astype(jnp.float32)                               # (6, 8, 2, 2)
    b2 = params["b2"].astype(jnp.float32)
    w3 = params["w3"].astype(jnp.float32)                               # (2, 6, 3, 3)
    b3 = params["b3"].astype(jnp.float32)
    wf = jnp.zeros((_C3, _C_PAD, _KF, _KF), jnp.float32)
    for p3 in range(_K3):
        for q3 in range(_K3):
            for r2 in range(_K2):
                for s2 in range(_K2):
                    wf = wf.at[:, :, p3 + r2, q3 + s2].add(
                        jnp.einsum('om,mi->oi', w3[:, :, p3, q3], w2[:, :, r2, s2]))
    bf = b3 + jnp.einsum('ompq,m->o', w3, b2)
    wf_pad = jnp.zeros((_C_PAD, _C_PAD, _KF, _KF), jnp.float32).at[:_C3].set(wf)
    wf_flat = wf_pad.transpose(0, 2, 3, 1).reshape(_C_PAD, _KF * _KF * _C_PAD)
    bf_pad = jnp.zeros((_C_PAD,), jnp.float32).at[:_C3].set(bf)

    # ---- single packed weight operand: [fused W | conv1 W | fused bias] ----
    w_pack = jnp.zeros((_C_PAD, 256), jnp.float32)
    w_pack = w_pack.at[:, 0:128].set(wf_flat)
    w_pack = w_pack.at[:, 128:136].set(w1_aug)
    w_pack = w_pack.at[:, 136].set(bf_pad)

    imgs_per_step = n if (_single_tensorcore() or n == 1) else 1
    out = _fused_forward_pallas(x_pack, w_pack, width=w, hw=hw,
                                imgs_per_step=imgs_per_step,
                                apply_relu=(activation == "relu"))

    # Lane-dense (8, N*HW) slab -> NCHW valid crop.
    out = out.reshape(_C_PAD, n, h, w).transpose(1, 0, 2, 3)
    return out[:, :_C3, :ho, :wo]


def init_params(key):
    """Deterministic parameters matching the PyTorch module's shapes (OIHW)."""
    ks = jax.random.split(key, 10)
    w1 = 0.1 * jax.random.normal(ks[0], (_C1, _C_IN), jnp.float32)          # 1x1 conv
    b1 = 0.1 * jax.random.normal(ks[1], (_C1,), jnp.float32)
    w2 = 0.1 * jax.random.normal(ks[2], (_C2, _C1, _K2, _K2), jnp.float32)
    b2 = 0.1 * jax.random.normal(ks[3], (_C2,), jnp.float32)
    w3 = 0.1 * jax.random.normal(ks[4], (_C3, _C2, _K3, _K3), jnp.float32)
    b3 = 0.1 * jax.random.normal(ks[5], (_C3,), jnp.float32)
    gamma = 1.0 + 0.1 * jax.random.normal(ks[6], (_C1,), jnp.float32)
    beta = 0.1 * jax.random.normal(ks[7], (_C1,), jnp.float32)
    running_mean = 0.1 * jax.random.normal(ks[8], (_C1,), jnp.float32)
    running_var = jnp.abs(jax.random.normal(ks[9], (_C1,), jnp.float32)) + 0.5
    return dict(w1=w1, b1=b1, w2=w2, b2=b2, w3=w3, b3=b3,
                gamma=gamma, beta=beta,
                running_mean=running_mean, running_var=running_var)


def _reference_forward(params, x_nchw, use_bn=True, activation="relu"):
    """Pure-JAX reference using lax.conv_general_dilated (for verification)."""
    dn = ("NCHW", "OIHW", "NCHW")

    def conv(x, w, b):
        y = lax.conv_general_dilated(x, w, (1, 1), "VALID", dimension_numbers=dn)
        return y + b.reshape(1, -1, 1, 1)

    x = x_nchw.astype(jnp.float32)
    x = conv(x, params["w1"].reshape(_C1, _C_IN, 1, 1), params["b1"])
    if use_bn:
        scale = params["gamma"] / jnp.sqrt(params["running_var"] + _BN_EPS)
        shift = params["beta"] - params["running_mean"] * scale
        x = x * scale.reshape(1, -1, 1, 1) + shift.reshape(1, -1, 1, 1)
    if activation == "relu":
        x = jnp.maximum(x, 0.0)
    x = conv(x, params["w2"], params["b2"])
    x = conv(x, params["w3"], params["b3"])
    return x


if __name__ == "__main__":
    key = jax.random.PRNGKey(0)
    pkey, xkey = jax.random.split(key)

    params = init_params(pkey)
    # PyTorch-style NCHW input: batch=2, channels=3, spatial=16x16.
    x = jax.random.normal(xkey, (2, 3, 16, 16), jnp.float32)

    fwd = jax.jit(functools.partial(conv2d_model_forward,
                                    use_bn=True, activation="relu"))
    out = jax.block_until_ready(fwd(params, x))
    assert out.shape == (2, 2, 13, 13), out.shape

    ref = jax.block_until_ready(
        _reference_forward(params, x, use_bn=True, activation="relu"))
    assert jnp.allclose(out, ref, atol=1e-4, rtol=1e-4), \
        float(jnp.max(jnp.abs(out - ref)))

    print("KERNEL_OK")
</pallas_src>

<mosaic_0001>
module attributes {stable_mosaic.version = 11 : i64} {
  func.func @_fused_kernel(%arg0: i32, %arg1: memref<8x512xf32, #tpu.memory_space<vmem>>, %arg2: memref<8x256xf32, #tpu.memory_space<vmem>>, %arg3: memref<8x512xf32, #tpu.memory_space<vmem>>) attributes {dimension_semantics = [#tpu.dimension_semantics<parallel>], iteration_bounds = array<i64: 1>, scalar_prefetch = 0 : i64, scratch_operands = 0 : i64, tpu.core_type = #tpu.core_type<tc>, window_params = [{transform_indices = @transform_0, window_bounds = array<i64: 8, 512>}, {pipeline_mode = #tpu.pipeline_mode<synchronous>, transform_indices = @transform_1, window_bounds = array<i64: 8, 256>}, {transform_indices = @transform_2, window_bounds = array<i64: 8, 512>}]} {
    %c0 = arith.constant 0 : index
    %c0_0 = arith.constant 0 : index
    %0 = vector.load %arg2[%c0, %c0_0] : memref<8x256xf32, #tpu.memory_space<vmem>>, vector<8x128xf32>
    %c0_1 = arith.constant 0 : index
    %c128 = arith.constant 128 : index
    %1 = vector.load %arg2[%c0_1, %c128] : memref<8x256xf32, #tpu.memory_space<vmem>>, vector<8x8xf32>
    %c0_2 = arith.constant 0 : index
    %c136 = arith.constant 136 : index
    %2 = vector.load %arg2[%c0_2, %c136] : memref<8x256xf32, #tpu.memory_space<vmem>>, vector<8x1xf32>
    %c0_3 = arith.constant 0 : index
    %c0_4 = arith.constant 0 : index
    %3 = vector.load %arg1[%c0_3, %c0_4] : memref<8x512xf32, #tpu.memory_space<vmem>>, vector<8x512xf32>
    %cst = arith.constant dense<0.000000e+00> : vector<8x512xf32>
    %4 = tpu.matmul %1, %3, %cst {dimension_numbers = #tpu.dot_dimension_numbers<[1], [0], [0], [1], [0, 0, 1, 1], [], []>} : vector<8x8xf32>, vector<8x512xf32>, vector<8x512xf32> -> vector<8x512xf32>
    %cst_5 = arith.constant 0.000000e+00 : f32
    %5 = vector.broadcast %cst_5 : f32 to vector<8x512xf32>
    %6 = arith.maximumf %4, %5 : vector<8x512xf32>
    %c511_i32 = arith.constant 511 : i32
    %7 = tpu.dynamic_rotate %6 by %c511_i32 dim 1 : vector<8x512xf32>, i32 -> vector<8x512xf32>
    %c510_i32 = arith.constant 510 : i32
    %8 = tpu.dynamic_rotate %6 by %c510_i32 dim 1 : vector<8x512xf32>, i32 -> vector<8x512xf32>
    %c509_i32 = arith.constant 509 : i32
    %9 = tpu.dynamic_rotate %6 by %c509_i32 dim 1 : vector<8x512xf32>, i32 -> vector<8x512xf32>
    %c496_i32 = arith.constant 496 : i32
    %10 = tpu.dynamic_rotate %6 by %c496_i32 dim 1 : vector<8x512xf32>, i32 -> vector<8x512xf32>
    %c495_i32 = arith.constant 495 : i32
    %11 = tpu.dynamic_rotate %6 by %c495_i32 dim 1 : vector<8x512xf32>, i32 -> vector<8x512xf32>
    %c494_i32 = arith.constant 494 : i32
    %12 = tpu.dynamic_rotate %6 by %c494_i32 dim 1 : vector<8x512xf32>, i32 -> vector<8x512xf32>
    %c493_i32 = arith.constant 493 : i32
    %13 = tpu.dynamic_rotate %6 by %c493_i32 dim 1 : vector<8x512xf32>, i32 -> vector<8x512xf32>
    %c480_i32 = arith.constant 480 : i32
    %14 = tpu.dynamic_rotate %6 by %c480_i32 dim 1 : vector<8x512xf32>, i32 -> vector<8x512xf32>
    %c479_i32 = arith.constant 479 : i32
    %15 = tpu.dynamic_rotate %6 by %c479_i32 dim 1 : vector<8x512xf32>, i32 -> vector<8x512xf32>
    %c478_i32 = arith.constant 478 : i32
    %16 = tpu.dynamic_rotate %6 by %c478_i32 dim 1 : vector<8x512xf32>, i32 -> vector<8x512xf32>
    %c477_i32 = arith.constant 477 : i32
    %17 = tpu.dynamic_rotate %6 by %c477_i32 dim 1 : vector<8x512xf32>, i32 -> vector<8x512xf32>
    %c464_i32 = arith.constant 464 : i32
    %18 = tpu.dynamic_rotate %6 by %c464_i32 dim 1 : vector<8x512xf32>, i32 -> vector<8x512xf32>
    %c463_i32 = arith.constant 463 : i32
    %19 = tpu.dynamic_rotate %6 by %c463_i32 dim 1 : vector<8x512xf32>, i32 -> vector<8x512xf32>
    %c462_i32 = arith.constant 462 : i32
    %20 = tpu.dynamic_rotate %6 by %c462_i32 dim 1 : vector<8x512xf32>, i32 -> vector<8x512xf32>
    %c461_i32 = arith.constant 461 : i32
    %21 = tpu.dynamic_rotate %6 by %c461_i32 dim 1 : vector<8x512xf32>, i32 -> vector<8x512xf32>
    %22 = tpu.concatenate %6, %7, %8, %9, %10, %11, %12, %13, %14, %15, %16, %17, %18, %19, %20, %21 in 0 : vector<8x512xf32>, vector<8x512xf32>, vector<8x512xf32>, vector<8x512xf32>, vector<8x512xf32>, vector<8x512xf32>, vector<8x512xf32>, vector<8x512xf32>, vector<8x512xf32>, vector<8x512xf32>, vector<8x512xf32>, vector<8x512xf32>, vector<8x512xf32>, vector<8x512xf32>, vector<8x512xf32>, vector<8x512xf32> -> vector<128x512xf32>
    %cst_6 = arith.constant dense<0.000000e+00> : vector<8x512xf32>
    %23 = tpu.matmul %0, %22, %cst_6 {dimension_numbers = #tpu.dot_dimension_numbers<[1], [0], [0], [1], [0, 0, 1, 1], [], []>} : vector<8x128xf32>, vector<128x512xf32>, vector<8x512xf32> -> vector<8x512xf32>
    %24 = vector.broadcast %2 : vector<8x1xf32> to vector<8x512xf32>
    %25 = arith.addf %23, %24 : vector<8x512xf32>
    %c0_7 = arith.constant 0 : index
    %c0_8 = arith.constant 0 : index
    %26 = vector.load %arg3[%c0_7, %c0_8] : memref<8x512xf32, #tpu.memory_space<vmem>>, vector<8x512xf32>
    tpu.vector_store %arg3[%c0_7, %c0_8], %25 {strides = array<i32>} : memref<8x512xf32, #tpu.memory_space<vmem>>, vector<8x512xf32>,
    return
  }
  func.func @transform_0(%arg0: i32) -> (i32, i32) {
    %c0_i32 = arith.constant 0 : i32
    %c0_i32_0 = arith.constant 0 : i32
    return %c0_i32, %arg0 : i32, i32
  }
  func.func @transform_1(%arg0: i32) -> (i32, i32) {
    %c0_i32 = arith.constant 0 : i32
    %c0_i32_0 = arith.constant 0 : i32
    %c0_i32_1 = arith.constant 0 : i32
    return %c0_i32, %c0_i32_0 : i32, i32
  }
  func.func @transform_2(%arg0: i32) -> (i32, i32) {
    %c0_i32 = arith.constant 0 : i32
    %c0_i32_0 = arith.constant 0 : i32
    return %c0_i32, %arg0 : i32, i32
  }
}

</mosaic_0001>

<bundles_post_ra>
// kernel: conv2d_model_forward.1
= control target key start
LH: loop header
LB: loop body
LE: loop exit
PB: predicated region body
PF: predicated region fallthrough
CT: control target
= control target key end

     0   :  { %v538_v3 = vmov 0.0   ;;  %vm17_vm0 = vcmask 64512   ;;  %s540_s19 = smov 78   ;;  %s541_s20 = smov 79   ;;  %v175_v14 = vlaneseq  ;;  %v553_v15 = vmov 8   ;;  %s890_s0 = inlined_call_operand.vmem [shape: f32[8,512], index: 0, kind: input, shape index: {}]   ;;  %s891_s1 = inlined_call_operand.vmem [shape: f32[8,256], index: 1, kind: input, shape index: {}]   ;;  %s892_s2 = inlined_call_operand.vmem [shape: f32[8,512], index: 2, kind: output, shape index: {}]  }
   0x1   :  { %v14_v0 = vld [vmem:[%s890_s0 + $0x8] sm:$0xff]  ;;  %v16_v1 = vld [vmem:[%s890_s0 + $0x18] sm:$0xff]  ;;  %v13_v2 = vld [vmem:[%s890_s0] sm:$0xff]  ;;  %85 = vmatprep.mubr.f32.mxu0 %v538_v3  ;;  %156 = vmatprep.mubr.f32.mxu1 %v538_v3  ;;  %s542_s21 = smov 80   ;;  %s543_s22 = smov 93  }
   0x2   :  { %51 = vmatprep.subr.mxu0 %v14_v0  ;;  %122 = vmatprep.subr.mxu1 %v16_v1  ;;  %v15_v4 = vld [vmem:[%s890_s0 + $0x10] sm:$0xff]  ;;  %v585_v5 = vld [vmem:[%s891_s1 + $0x8] sm:$0xff]  ;;  %s539_s0 = smov 77   ;;  %s544_s23 = smov 94   ;;  %v659_v16 = vand.u32 127, %v175_v14 }
   0x3   :  { %52 = vmatpush1.msra.mxu0 %v13_v2  ;;  %123 = vmatpush1.msra.mxu1 %v15_v4  ;;  %s545_s24 = smov 95   ;;  %s546_s25 = smov 96  }
   0x4   :  { %518 = vmatmul.mubr.msk.f32.vlgmr.msra.gmra.mxu0 %vm17_vm0, %v585_v5  ;;  %519 = vmatmul.mubr.msk.f32.vlgmr.msra.gmra.mxu1 %vm17_vm0, %v585_v5  ;;  %s547_s26 = smov 109   ;;  %s548_s27 = smov 110   ;;  %vm359_vm1 = vcmp.lt.s32.totalorder %v659_v16, 77  ;;  %vm346_vm2 = vcmp.lt.s32.totalorder %v659_v16, 78  ;;  %vm333_vm3 = vcmp.lt.s32.totalorder %v659_v16, 79  ;;  %vm320_vm4 = vcmp.lt.s32.totalorder %v659_v16, 80 }
   0x5   :  { %432 = vmatprep.mubr.f32.mxu0 %v538_v3  ;;  %503 = vmatprep.mubr.f32.mxu1 %v538_v3  ;;  %s549_s28 = smov 111   ;;  %s550_s29 = smov 112   ;;  %vm307_vm5 = vcmp.lt.s32.totalorder %v659_v16, 93  ;;  %vm294_vm6 = vcmp.lt.s32.totalorder %v659_v16, 94  ;;  %vm281_vm7 = vcmp.lt.s32.totalorder %v659_v16, 95  ;;  %vm268_vm8 = vcmp.lt.s32.totalorder %v659_v16, 96 }
   0x6   :  { %s551_s30 = smov 125   ;;  %s552_s3 = smov 126   ;;  %537 = vset.pattern.permute.xlu0 %v553_v15  ;;  %vm255_vm9 = vcmp.lt.s32.totalorder %v659_v16, 109  ;;  %vm242_vm10 = vcmp.lt.s32.totalorder %v659_v16, 110  ;;  %vm229_vm11 = vcmp.lt.s32.totalorder %v659_v16, 111  ;;  %vm216_vm12 = vcmp.lt.s32.totalorder %v659_v16, 112 }
   0x7   :  { %s554_s4 = smov 127   ;;  %vm203_vm13 = vcmp.lt.s32.totalorder %v659_v16, 125  ;;  %vm190_vm14 = vcmp.lt.s32.totalorder %v659_v16, 126  ;;  %vm177_vm15 = vcmp.lt.s32.totalorder %v659_v16, 127 }
  0xc4   :  { %v87_v6 = vpop.f32.mrf.mxu0  ;;  %v158_v7 = vpop.f32.mrf.mxu1 }
  0xc5   :  { %v589_v8 = vmax.f32 %v87_v6, 0.0  ;;  %v591_v9 = vmax.f32 %v158_v7, 0.0 }
  0xc6   :  { %v160_v10 = vpop.f32.mrf.mxu1  ;;  %v89_v12 = vpop.f32.mrf.mxu0 }
  0xc7   :  { %355 = vrot.lane.b32.xlu1 %v591_v9, %s539_s0  ;;  %351 = vrot.lane.b32.xlu0 %v589_v8, %s539_s0  ;;  %v597_v11 = vmax.f32 %v160_v10, 0.0  ;;  %v602_v13 = vmax.f32 %v89_v12, 0.0 }
  0xcb   :  { %357 = vrot.lane.b32.xlu1 %v597_v11, %s539_s0  ;;  %338 = vrot.lane.b32.xlu0 %v589_v8, %s540_s19 }
  0xcf   :  { %342 = vrot.lane.b32.xlu0 %v591_v9, %s540_s19  ;;  %340 = vrot.lane.b32.xlu1 %v602_v13, %s540_s19 }
  0xd3   :  { %325 = vrot.lane.b32.xlu0 %v589_v8, %s541_s20  ;;  %344 = vrot.lane.b32.xlu1 %v597_v11, %s540_s19 }
  0xd7   :  { %329 = vrot.lane.b32.xlu0 %v591_v9, %s541_s20  ;;  %327 = vrot.lane.b32.xlu1 %v602_v13, %s541_s20 }
  0xdb   :  { %312 = vrot.lane.b32.xlu0 %v589_v8, %s542_s21  ;;  %331 = vrot.lane.b32.xlu1 %v597_v11, %s541_s20 }
  0xdf   :  { %316 = vrot.lane.b32.xlu0 %v591_v9, %s542_s21  ;;  %314 = vrot.lane.b32.xlu1 %v602_v13, %s542_s21 }
  0xe3   :  { %299 = vrot.lane.b32.xlu0 %v589_v8, %s543_s22  ;;  %318 = vrot.lane.b32.xlu1 %v597_v11, %s542_s21 }
  0xe7   :  { %303 = vrot.lane.b32.xlu0 %v591_v9, %s543_s22  ;;  %301 = vrot.lane.b32.xlu1 %v602_v13, %s543_s22 }
  0xeb   :  { %286 = vrot.lane.b32.xlu0 %v589_v8, %s544_s23  ;;  %305 = vrot.lane.b32.xlu1 %v597_v11, %s543_s22 }
  0xef   :  { %290 = vrot.lane.b32.xlu0 %v591_v9, %s544_s23  ;;  %288 = vrot.lane.b32.xlu1 %v602_v13, %s544_s23 }
  0xf3   :  { %273 = vrot.lane.b32.xlu0 %v589_v8, %s545_s24  ;;  %292 = vrot.lane.b32.xlu1 %v597_v11, %s544_s23 }
  0xf7   :  { %277 = vrot.lane.b32.xlu0 %v591_v9, %s545_s24  ;;  %275 = vrot.lane.b32.xlu1 %v602_v13, %s545_s24 }
  0xfb   :  { %260 = vrot.lane.b32.xlu0 %v589_v8, %s546_s25  ;;  %279 = vrot.lane.b32.xlu1 %v597_v11, %s545_s24 }
  0xff   :  { %264 = vrot.lane.b32.xlu0 %v591_v9, %s546_s25  ;;  %262 = vrot.lane.b32.xlu1 %v602_v13, %s546_s25 }
 0x103   :  { %247 = vrot.lane.b32.xlu0 %v589_v8, %s547_s26  ;;  %266 = vrot.lane.b32.xlu1 %v597_v11, %s546_s25 }
 0x107   :  { %251 = vrot.lane.b32.xlu0 %v591_v9, %s547_s26  ;;  %249 = vrot.lane.b32.xlu1 %v602_v13, %s547_s26 }
 0x10b   :  { %234 = vrot.lane.b32.xlu0 %v589_v8, %s548_s27  ;;  %253 = vrot.lane.b32.xlu1 %v597_v11, %s547_s26 }
 0x10f   :  { %238 = vrot.lane.b32.xlu0 %v591_v9, %s548_s27  ;;  %236 = vrot.lane.b32.xlu1 %v602_v13, %s548_s27 }
 0x113   :  { %221 = vrot.lane.b32.xlu0 %v589_v8, %s549_s28  ;;  %240 = vrot.lane.b32.xlu1 %v597_v11, %s548_s27 }
 0x117   :  { %225 = vrot.lane.b32.xlu0 %v591_v9, %s549_s28  ;;  %223 = vrot.lane.b32.xlu1 %v602_v13, %s549_s28 }
 0x11b   :  { %208 = vrot.lane.b32.xlu0 %v589_v8, %s550_s29  ;;  %227 = vrot.lane.b32.xlu1 %v597_v11, %s549_s28 }
 0x11f   :  { %210 = vrot.lane.b32.xlu1 %v602_v13, %s550_s29  ;;  %353 = vrot.lane.b32.xlu0 %v602_v13, %s539_s0 }
 0x123   :  { %214 = vrot.lane.b32.xlu1 %v597_v11, %s550_s29  ;;  %212 = vrot.lane.b32.xlu0 %v591_v9, %s550_s29 }
 0x127   :  { %197 = vrot.lane.b32.xlu1 %v602_v13, %s551_s30  ;;  %195 = vrot.lane.b32.xlu0 %v589_v8, %s551_s30 }
 0x12b   :  { %201 = vrot.lane.b32.xlu1 %v597_v11, %s551_s30  ;;  %199 = vrot.lane.b32.xlu0 %v591_v9, %s551_s30 }
 0x12f   :  { %184 = vrot.lane.b32.xlu1 %v602_v13, %s552_s3  ;;  %182 = vrot.lane.b32.xlu0 %v589_v8, %s552_s3 }
 0x133   :  { %188 = vrot.lane.b32.xlu1 %v597_v11, %s552_s3  ;;  %186 = vrot.lane.b32.xlu0 %v591_v9, %s552_s3 }
 0x137   :  { %169 = vrot.lane.b32.xlu1 %v602_v13, %s554_s4  ;;  %167 = vrot.lane.b32.xlu0 %v589_v8, %s554_s4 }
 0x139   :  { %v661_v17 = vpop.permute.xlu1 %355  ;;  %v663_v18 = vpop.permute.xlu0 %351 }
 0x13b   :  { %173 = vrot.lane.b32.xlu1 %v597_v11, %s554_s4  ;;  %171 = vrot.lane.b32.xlu0 %v591_v9, %s554_s4 }
 0x13d   :  { %v358_v19 = vpop.permute.xlu1 %357  ;;  %v339_v20 = vpop.permute.xlu0 %338 }
 0x13e   :  { %v360_v21 = vsel %vm359_vm1, %v661_v17, %v358_v19  ;;  %v363_v22 = vsel %vm359_vm1, %v358_v19, %v663_v18 }
 0x13f   :  { %439 = vmatprep.subr.mxu1 %v363_v22  ;;  %365 = vperm.xlu0 %537, %v585_v5  }
 0x140   :  { %440 = vmatpush1.msra.mxu1 %v360_v21 }
 0x141   :  { %v343_v23 = vpop.permute.xlu0 %342  ;;  %v341_v24 = vpop.permute.xlu1 %340 }
 0x142   :  { %v676_v25 = vsel %vm346_vm2, %v339_v20, %v341_v24  ;;  %v678_v26 = vsel %vm346_vm2, %v341_v24, %v343_v23 }
 0x145   :  { %v326_v27 = vpop.permute.xlu0 %325  ;;  %v345_v28 = vpop.permute.xlu1 %344 }
 0x146   :  { %v347_v29 = vsel %vm346_vm2, %v343_v23, %v345_v28  ;;  %v350_v30 = vsel %vm346_vm2, %v345_v28, %v339_v20 }
 0x147   :  { %441 = vmatprep.subr.mxu1 %v350_v30 }
 0x148   :  { %442 = vmatpush1.msra.mxu1 %v347_v29 }
 0x149   :  { %v330_v31 = vpop.permute.xlu0 %329  ;;  %v328_v32 = vpop.permute.xlu1 %327 }
 0x14a   :  { %v681_v33 = vsel %vm333_vm3, %v326_v27, %v328_v32  ;;  %v683_v34 = vsel %vm333_vm3, %v328_v32, %v330_v31 }
 0x14d   :  { %v313_v35 = vpop.permute.xlu0 %312  ;;  %v332_v36 = vpop.permute.xlu1 %331 }
 0x14e   :  { %v334_v37 = vsel %vm333_vm3, %v330_v31, %v332_v36  ;;  %v337_v38 = vsel %vm333_vm3, %v332_v36, %v326_v27 }
 0x14f   :  { %443 = vmatprep.subr.mxu1 %v337_v38 }
 0x150   :  { %444 = vmatpush1.msra.mxu1 %v334_v37 }
 0x151   :  { %v317_v39 = vpop.permute.xlu0 %316  ;;  %v315_v40 = vpop.permute.xlu1 %314 }
 0x152   :  { %v686_v41 = vsel %vm320_vm4, %v313_v35, %v315_v40  ;;  %v688_v42 = vsel %vm320_vm4, %v315_v40, %v317_v39 }
 0x155   :  { %v300_v43 = vpop.permute.xlu0 %299  ;;  %v319_v44 = vpop.permute.xlu1 %318 }
 0x156   :  { %v321_v45 = vsel %vm320_vm4, %v317_v39, %v319_v44  ;;  %v324_v46 = vsel %vm320_vm4, %v319_v44, %v313_v35 }
 0x157   :  { %445 = vmatprep.subr.mxu1 %v324_v46 }
 0x158   :  { %446 = vmatpush1.msra.mxu1 %v321_v45 }
 0x159   :  { %v304_v47 = vpop.permute.xlu0 %303  ;;  %v302_v48 = vpop.permute.xlu1 %301 }
 0x15a   :  { %v691_v49 = vsel %vm307_vm5, %v300_v43, %v302_v48  ;;  %v693_v50 = vsel %vm307_vm5, %v302_v48, %v304_v47 }
 0x15d   :  { %v695_v51 = vpop.permute.xlu0 %286  ;;  %v306_v52 = vpop.permute.xlu1 %305 }
 0x15e   :  { %v308_v53 = vsel %vm307_vm5, %v304_v47, %v306_v52  ;;  %v311_v54 = vsel %vm307_vm5, %v306_v52, %v300_v43 }
 0x15f   :  { %447 = vmatprep.subr.mxu1 %v311_v54 }
 0x160   :  { %448 = vmatpush1.msra.mxu1 %v308_v53 }
 0x161   :  { %v697_v55 = vpop.permute.xlu0 %290  ;;  %v699_v56 = vpop.permute.xlu1 %288 }
 0x165   :  { %v702_v57 = vpop.permute.xlu0 %273  ;;  %v293_v58 = vpop.permute.xlu1 %292 }
 0x166   :  { %v295_v59 = vsel %vm294_vm6, %v697_v55, %v293_v58  ;;  %v298_v60 = vsel %vm294_vm6, %v293_v58, %v695_v51 }
 0x167   :  { %449 = vmatprep.subr.mxu1 %v298_v60 }
 0x168   :  { %450 = vmatpush1.msra.mxu1 %v295_v59 }
 0x169   :  { %v710_v61 = vpop.permute.xlu0 %277  ;;  %v712_v62 = vpop.permute.xlu1 %275 }
 0x16a   :  { %v283_v47 = vsel %vm281_vm7, %v712_v62, %v710_v61 }
 0x16d   :  { %v715_v63 = vpop.permute.xlu0 %260  ;;  %v280_v0 = vpop.permute.xlu1 %279 }
 0x16e   :  { %v282_v1 = vsel %vm281_vm7, %v710_v61, %v280_v0  ;;  %v285_v2 = vsel %vm281_vm7, %v280_v0, %v702_v57 }
 0x16f   :  { %451 = vmatprep.subr.mxu1 %v285_v2 }
 0x170   :  { %452 = vmatpush1.msra.mxu1 %v282_v1 }
 0x171   :  { %v723_v3 = vpop.permute.xlu0 %264  ;;  %v725_v4 = vpop.permute.xlu1 %262 }
 0x175   :  { %v728_v5 = vpop.permute.xlu0 %247  ;;  %v267_v6 = vpop.permute.xlu1 %266 }
 0x176   :  { %v269_v7 = vsel %vm268_vm8, %v723_v3, %v267_v6  ;;  %v272_v10 = vsel %vm268_vm8, %v267_v6, %v715_v63 }
 0x177   :  { %453 = vmatprep.subr.mxu1 %v272_v10 }
 0x178   :  { %454 = vmatpush1.msra.mxu1 %v269_v7 }
 0x179   :  { %v736_v12 = vpop.permute.xlu0 %251  ;;  %v738_v14 = vpop.permute.xlu1 %249 }
 0x17a   :  { %v257_v54 = vsel %vm255_vm9, %v738_v14, %v736_v12 }
 0x17d   :  { %v741_v15 = vpop.permute.xlu0 %234  ;;  %v254_v19 = vpop.permute.xlu1 %253 }
 0x17e   :  { %v256_v20 = vsel %vm255_vm9, %v736_v12, %v254_v19  ;;  %v259_v21 = vsel %vm255_vm9, %v254_v19, %v728_v5 }
 0x17f   :  { %455 = vmatprep.subr.mxu1 %v259_v21  ;;  %v11_v21 = vld [vmem:[%s891_s1] sm:$0xff] }
 0x180   :  { %456 = vmatpush1.msra.mxu1 %v256_v20 }
 0x181   :  { %v749_v22 = vpop.permute.xlu0 %238  ;;  %v751_v23 = vpop.permute.xlu1 %236 }
 0x185   :  { %v754_v24 = vpop.permute.xlu0 %221  ;;  %v241_v27 = vpop.permute.xlu1 %240 }
 0x186   :  { %v243_v28 = vsel %vm242_vm10, %v749_v22, %v241_v27  ;;  %v246_v29 = vsel %vm242_vm10, %v241_v27, %v741_v15 }
 0x187   :  { %457 = vmatprep.subr.mxu1 %v246_v29 }
 0x188   :  { %458 = vmatpush1.msra.mxu1 %v243_v28 }
 0x189   :  { %v762_v30 = vpop.permute.xlu0 %225  ;;  %v764_v31 = vpop.permute.xlu1 %223 }
 0x18a   :  { %v231_v61 = vsel %vm229_vm11, %v764_v31, %v762_v30 }
 0x18d   :  { %v767_v32 = vpop.permute.xlu0 %208  ;;  %v228_v35 = vpop.permute.xlu1 %227 }
 0x18e   :  { %v230_v36 = vsel %vm229_vm11, %v762_v30, %v228_v35  ;;  %v233_v37 = vsel %vm229_vm11, %v228_v35, %v754_v24 }
 0x18f   :  { %459 = vmatprep.subr.mxu1 %v233_v37 }
 0x190   :  { %460 = vmatpush1.msra.mxu1 %v230_v36 }
 0x191   :  { %v775_v38 = vpop.permute.xlu1 %210  ;;  %v354_v39 = vpop.permute.xlu0 %353 }
 0x192   :  { %v362_v40 = vsel %vm359_vm1, %v663_v18, %v354_v39  ;;  %v361_v43 = vsel %vm359_vm1, %v354_v39, %v661_v17  ;;  %v219_v1 = vsel %vm216_vm12, %v767_v32, %v775_v38 }
 0x193   :  { %368 = vmatprep.subr.mxu0 %v361_v43 }
 0x194   :  { %369 = vmatpush1.msra.mxu0 %v362_v40 }
 0x195   :  { %v215_v44 = vpop.permute.xlu1 %214  ;;  %370 = vmatprep.subr.mxu0 %v678_v26  ;;  %v213_v45 = vpop.permute.xlu0 %212 }
 0x196   :  { %v217_v46 = vsel %vm216_vm12, %v213_v45, %v215_v44  ;;  %371 = vmatpush1.msra.mxu0 %v676_v25  ;;  %v220_v18 = vsel %vm216_vm12, %v215_v44, %v767_v32  ;;  %v296_v25 = vsel %vm294_vm6, %v699_v56, %v697_v55  ;;  %v258_v55 = vsel %vm255_vm9, %v728_v5, %v738_v14 }
 0x197   :  { %372 = vmatprep.subr.mxu0 %v683_v34  ;;  %461 = vmatprep.subr.mxu1 %v220_v18  ;;  %v218_v0 = vsel %vm216_vm12, %v775_v38, %v213_v45 }
 0x198   :  { %373 = vmatpush1.msra.mxu0 %v681_v33  ;;  %462 = vmatpush1.msra.mxu1 %v217_v46  ;;  %v297_v33 = vsel %vm294_vm6, %v695_v51, %v699_v56  ;;  %v271_v51 = vsel %vm268_vm8, %v715_v63, %v725_v4  ;;  %v244_v56 = vsel %vm242_vm10, %v751_v23, %v749_v22 }
 0x199   :  { %v198_v17 = vpop.permute.xlu1 %197  ;;  %374 = vmatprep.subr.mxu0 %v688_v42  ;;  %v196_v26 = vpop.permute.xlu0 %195  ;;  %v232_v63 = vsel %vm229_vm11, %v754_v24, %v764_v31 }
 0x19a   :  { %375 = vmatpush1.msra.mxu0 %v686_v41  ;;  %v206_v5 = vsel %vm203_vm13, %v196_v26, %v198_v17 }
 0x19b   :  { %376 = vmatprep.subr.mxu0 %v693_v50  ;;  %v270_v50 = vsel %vm268_vm8, %v725_v4, %v723_v3 }
 0x19c   :  { %377 = vmatpush1.msra.mxu0 %v691_v49  ;;  %v284_v49 = vsel %vm281_vm7, %v702_v57, %v712_v62  ;;  %v245_v57 = vsel %vm242_vm10, %v741_v15, %v751_v23 }
 0x19d   :  { %v202_v34 = vpop.permute.xlu1 %201  ;;  %378 = vmatprep.subr.mxu0 %v296_v25  ;;  %v200_v42 = vpop.permute.xlu0 %199 }
 0x19e   :  { %v204_v41 = vsel %vm203_vm13, %v200_v42, %v202_v34  ;;  %379 = vmatpush1.msra.mxu0 %v297_v33  ;;  %v207_v48 = vsel %vm203_vm13, %v202_v34, %v196_v26  ;;  %v205_v4 = vsel %vm203_vm13, %v198_v17, %v200_v42 }
 0x19f   :  { %380 = vmatprep.subr.mxu0 %v283_v47  ;;  %463 = vmatprep.subr.mxu1 %v207_v48 }
 0x1a0   :  { %381 = vmatpush1.msra.mxu0 %v284_v49  ;;  %464 = vmatpush1.msra.mxu1 %v204_v41 }
 0x1a1   :  { %v185_v52 = vpop.permute.xlu1 %184  ;;  %382 = vmatprep.subr.mxu0 %v270_v50  ;;  %v183_v53 = vpop.permute.xlu0 %182 }
 0x1a2   :  { %383 = vmatpush1.msra.mxu0 %v271_v51  ;;  %v193_v7 = vsel %vm190_vm14, %v183_v53, %v185_v52 }
 0x1a3   :  { %384 = vmatprep.subr.mxu0 %v257_v54 }
 0x1a4   :  { %385 = vmatpush1.msra.mxu0 %v258_v55 }
 0x1a5   :  { %v189_v58 = vpop.permute.xlu1 %188  ;;  %386 = vmatprep.subr.mxu0 %v244_v56  ;;  %v187_v59 = vpop.permute.xlu0 %186 }
 0x1a6   :  { %v191_v60 = vsel %vm190_vm14, %v187_v59, %v189_v58  ;;  %387 = vmatpush1.msra.mxu0 %v245_v57  ;;  %v194_v62 = vsel %vm190_vm14, %v189_v58, %v183_v53  ;;  %v192_v6 = vsel %vm190_vm14, %v185_v52, %v187_v59 }
 0x1a7   :  { %388 = vmatprep.subr.mxu0 %v231_v61  ;;  %465 = vmatprep.subr.mxu1 %v194_v62 }
 0x1a8   :  { %389 = vmatpush1.msra.mxu0 %v232_v63  ;;  %466 = vmatpush1.msra.mxu1 %v191_v60 }
 0x1a9   :  { %v170_v2 = vpop.permute.xlu1 %169  ;;  %390 = vmatprep.subr.mxu0 %v218_v0  ;;  %v168_v3 = vpop.permute.xlu0 %167 }
 0x1aa   :  { %391 = vmatpush1.msra.mxu0 %v219_v1  ;;  %v180_v20 = vsel %vm177_vm15, %v168_v3, %v170_v2 }
 0x1ab   :  { %392 = vmatprep.subr.mxu0 %v205_v4 }
 0x1ac   :  { %393 = vmatpush1.msra.mxu0 %v206_v5 }
 0x1ad   :  { %v174_v10 = vpop.permute.xlu1 %173  ;;  %394 = vmatprep.subr.mxu0 %v192_v6  ;;  %v172_v12 = vpop.permute.xlu0 %171 }
 0x1ae   :  { %v178_v14 = vsel %vm177_vm15, %v172_v12, %v174_v10  ;;  %395 = vmatpush1.msra.mxu0 %v193_v7  ;;  %v179_v15 = vsel %vm177_vm15, %v170_v2, %v172_v12  ;;  %v181_v19 = vsel %vm177_vm15, %v174_v10, %v168_v3 }
 0x1af   :  { %396 = vmatprep.subr.mxu0 %v179_v15  ;;  %467 = vmatprep.subr.mxu1 %v181_v19 }
 0x1b0   :  { %397 = vmatpush1.msra.mxu0 %v180_v20  ;;  %468 = vmatpush1.msra.mxu1 %v178_v14 }
 0x1b1   :  { %398 = vmatprep.subr.mxu0 %v602_v13  ;;  %469 = vmatprep.subr.mxu1 %v597_v11 }
 0x1b2   :  { %399 = vmatpush1.msra.mxu0 %v589_v8  ;;  %470 = vmatpush1.msra.mxu1 %v591_v9 }
 0x1b3   :  { %433 = vmatmul.mubr.f32.vlgmr.msra.gmra.mxu0 %v11_v21  ;;  %504 = vmatmul.mubr.f32.vlgmr.msra.gmra.mxu1 %v11_v21 }
 0x1ba   :  { %v366_v16 = vpop.permute.xlu0 %365 }
 0x273   :  { %v434_v22 = vpop.f32.mrf.mxu0  ;;  %v505_v23 = vpop.f32.mrf.mxu1 }
 0x274   :  { %v435_v24 = vadd.f32 %v434_v22, %v366_v16  ;;  %v506_v27 = vadd.f32 %v505_v23, %v366_v16 }
 0x275   :  { %v436_v28 = vpop.f32.mrf.mxu0  ;;  %v507_v29 = vpop.f32.mrf.mxu1 }
 0x276   :  { %510 = vst [vmem:[%s892_s2] sm:$0xff] %v435_v24  ;;  %512 = vst [vmem:[%s892_s2 + $0x10] sm:$0xff] %v506_v27  ;;  %v437_v8 = vadd.f32 %v436_v28, %v366_v16  ;;  %v508_v11 = vadd.f32 %v507_v29, %v366_v16 }
 0x278   :  { %511 = vst [vmem:[%s892_s2 + $0x8] sm:$0xff] %v437_v8  ;;  %513 = vst [vmem:[%s892_s2 + $0x18] sm:$0xff] %v508_v11 }

</bundles_post_ra>
